<compile_context>
chip_gen: v7x
topology: tpu7x:2x2x1
jax: 0.10.0
libtpu: 0.0.40
codegen_flags: <defaults>
</compile_context>

<pallas_src>
import functools

import numpy as np
import jax
import jax.numpy as jnp
from jax.experimental import pallas as pl
from jax.experimental.pallas import tpu as pltpu


# ----------------------------------------------------------------------------
# Host-side construction of the shift-folded inverse-DFT matrices (cached).
# ----------------------------------------------------------------------------
def _build_shifted_idft(n: int) -> np.ndarray:
    """Complex B with (B @ v) = fftshift(ifft(ifftshift(v), norm='ortho'))."""
    k = np.arange(n)
    # orthonormal inverse DFT: exp(+2*pi*i*m*u/n) / sqrt(n)
    A = np.exp(2j * np.pi * np.outer(k, k) / n) / np.sqrt(n)
    s_in = (n + 1) // 2   # ifftshift roll amount (== roll by -(n//2))
    s_out = n // 2        # fftshift roll amount
    B = np.roll(A, -s_in, axis=1)   # fold ifftshift of the input into columns
    B = np.roll(B, s_out, axis=0)   # fold fftshift of the output into rows
    return B


@functools.lru_cache(maxsize=None)
def _kron_constants(H: int, W: int):
    BH = _build_shifted_idft(H)
    BW = _build_shifted_idft(W)
    # Row-major flatten: vec(B_H @ Z @ B_W^T) = (B_H kron B_W) @ vec(Z).
    K = np.kron(BH, BW)
    krt = jnp.asarray(np.ascontiguousarray(K.real.T), dtype=jnp.float32)
    kit = jnp.asarray(np.ascontiguousarray(K.imag.T), dtype=jnp.float32)
    kst = jnp.asarray(np.ascontiguousarray((K.real + K.imag).T),
                      dtype=jnp.float32)
    return krt, kit, kst


@functools.lru_cache(maxsize=None)
def _separable_constants(H: int, W: int):
    BH = _build_shifted_idft(H)
    BW = _build_shifted_idft(W)
    hr = jnp.asarray(BH.real, dtype=jnp.float32)
    hi = jnp.asarray(BH.imag, dtype=jnp.float32)
    hs = jnp.asarray(BH.real + BH.imag, dtype=jnp.float32)
    wrt = jnp.asarray(np.ascontiguousarray(BW.real.T), dtype=jnp.float32)
    wit = jnp.asarray(np.ascontiguousarray(BW.imag.T), dtype=jnp.float32)
    wst = jnp.asarray(np.ascontiguousarray((BW.real + BW.imag).T),
                      dtype=jnp.float32)
    return hr, hi, hs, wrt, wit, wst


# ----------------------------------------------------------------------------
# Generation-aware VMEM budget & batch-tile picker.
# ----------------------------------------------------------------------------
def _vmem_capacity_bytes() -> int:
    try:
        cap = getattr(pltpu.get_tpu_info(), "vmem_capacity_bytes", None)
        if cap:
            return int(cap)             # 128 MiB on v5e/v6e, 64 MiB on v7x
    except Exception:
        pass
    return 64 << 20                     # conservative (v7x) if query fails


def _const_spec(shape, index_map):
    """Grid-invariant input: single-buffered to save VMEM (key on v7x)."""
    try:
        return pl.BlockSpec(shape, index_map, pipeline_mode=pl.Buffered(1))
    except (TypeError, AttributeError):
        return pl.BlockSpec(shape, index_map)


def _pick_bb(batch: int, per_image_bytes: int, target_bytes: int,
             cap_images: int) -> int:
    """Images per grid step: big MXU-friendly M, no degenerate M=1 splits."""
    bb = max(1, min(int(cap_images), target_bytes // max(per_image_bytes, 1)))
    if bb >= batch:
        return batch                     # one fat step, no padding
    if bb >= 8:
        bb = (bb // 8) * 8               # sublane-dense input tiles
    # Prefer a divisor of batch (skips the zero-pad HBM round-trip) as long as
    # it does not shrink the tile by more than ~2x.
    d = max(v for v in range(1, bb + 1) if batch % v == 0)
    if d >= max(bb // 2, 1):
        bb = d
    return bb


# ----------------------------------------------------------------------------
# Path 1: Kronecker (single-matmul) kernel for small H*W.
# ----------------------------------------------------------------------------
def _kron_kernel(x_ref, krt_ref, kit_ref, kst_ref, o_ref):
    # x_ref / o_ref: (bb, 2*HW) -- real in lanes [:HW], imag in lanes [HW:].
    HW = krt_ref.shape[0]
    zr = x_ref[:, :HW]
    zi = x_ref[:, HW:]

    # Gauss 3-multiply complex matmul:  out = z @ K^T  (batch folded into M)
    m1 = jnp.dot(zr, krt_ref[...], preferred_element_type=jnp.float32)
    m2 = jnp.dot(zi, kit_ref[...], preferred_element_type=jnp.float32)
    m3 = jnp.dot(zr + zi, kst_ref[...], preferred_element_type=jnp.float32)

    o_ref[:, :HW] = m1 - m2             # real
    o_ref[:, HW:] = m3 - m1 - m2        # imag


def _freq_to_space_kron(x: jax.Array) -> jax.Array:
    B, _, H, W = x.shape
    HW = H * W
    krt, kit, kst = _kron_constants(H, W)

    cap = _vmem_capacity_bytes()
    const_bytes = 3 * HW * HW * 4                       # single-buffered
    per_image = 2 * HW * 4
    budget = max(16 << 20, cap - (12 << 20)) - const_bytes
    cap_images = max(1, budget // (8 * per_image))      # in/out dbl-buf + temps
    bb = _pick_bb(B, per_image, 8 << 20, cap_images)

    Bp = -(-B // bb) * bb
    xf = x.reshape(B, 2 * HW)            # free collapse -> lane-dense blocks
    if Bp != B:                          # rare: only when no good divisor
        xf = jnp.concatenate(
            [xf, jnp.zeros((Bp - B, 2 * HW), xf.dtype)], axis=0)

    grid = (Bp // bb,)
    io_spec = pl.BlockSpec((bb, 2 * HW), lambda b: (b, 0))
    k_spec = _const_spec((HW, HW), lambda b: (0, 0))

    tile_bytes = bb * per_image
    # in(2 buf) + out(2 buf) + ~3x temporaries + constants + headroom
    est = 7 * tile_bytes + const_bytes + (6 << 20)
    vmem_limit = int(min(cap - (4 << 20), max(32 << 20, est)))

    out = pl.pallas_call(
        _kron_kernel,
        out_shape=jax.ShapeDtypeStruct((Bp, 2 * HW), jnp.float32),
        grid=grid,
        in_specs=[io_spec, k_spec, k_spec, k_spec],
        out_specs=io_spec,
        compiler_params=pltpu.CompilerParams(
            dimension_semantics=("parallel",),
            vmem_limit_bytes=vmem_limit),
        cost_estimate=pl.CostEstimate(
            flops=int(3 * 2 * Bp * HW * HW),
            transcendentals=0,
            bytes_accessed=int(2 * Bp * per_image + const_bytes)),
    )(xf, krt, kit, kst)

    return out[:B].reshape(B, 2, H, W)


# ----------------------------------------------------------------------------
# Path 2: separable two-stage kernel (fallback for large H*W), batched.
# ----------------------------------------------------------------------------
def _separable_kernel(x_ref, wrt_ref, wit_ref, wst_ref, hr_ref, hi_ref, hs_ref,
                      o_ref, sr_scr, si_scr):
    # x_ref / o_ref: (bb, 2, H, W); sr_scr / si_scr: (bb, H, W) VMEM scratch.
    bb, _, H, W = x_ref.shape
    batched_a = (H % 8 == 0)   # (bb,H,W)->(bb*H,W) collapse is layout-free

    if batched_a:
        # Stage A (batch*rows folded into MXU M):  S = Z @ B_W^T  (Gauss)
        x = x_ref[...]
        zr = x[:, 0, :, :].reshape(bb * H, W)
        zi = x[:, 1, :, :].reshape(bb * H, W)
        a1 = jnp.dot(zr, wrt_ref[...], preferred_element_type=jnp.float32)
        a2 = jnp.dot(zi, wit_ref[...], preferred_element_type=jnp.float32)
        a3 = jnp.dot(zr + zi, wst_ref[...], preferred_element_type=jnp.float32)
        sr_scr[...] = (a1 - a2).reshape(bb, H, W)
        si_scr[...] = (a3 - a1 - a2).reshape(bb, H, W)
    else:
        wrt = wrt_ref[...]
        wit = wit_ref[...]
        wst = wst_ref[...]

    hr = hr_ref[...]
    hi = hi_ref[...]
    hs = hs_ref[...]

    # Stage B:  out = B_H @ S   (Gauss), per image; bb is a small static int.
    for b in range(bb):
        if batched_a:
            sr = sr_scr[b]
            si = si_scr[b]
        else:
            zr_b = x_ref[b, 0]
            zi_b = x_ref[b, 1]
            a1 = jnp.dot(zr_b, wrt, preferred_element_type=jnp.float32)
            a2 = jnp.dot(zi_b, wit, preferred_element_type=jnp.float32)
            a3 = jnp.dot(zr_b + zi_b, wst, preferred_element_type=jnp.float32)
            sr = a1 - a2
            si = a3 - a1 - a2
        b1 = jnp.dot(hr, sr, preferred_element_type=jnp.float32)
        b2 = jnp.dot(hi, si, preferred_element_type=jnp.float32)
        b3 = jnp.dot(hs, sr + si, preferred_element_type=jnp.float32)
        o_ref[b, 0, :, :] = b1 - b2
        o_ref[b, 1, :, :] = b3 - b1 - b2


def _freq_to_space_separable(x: jax.Array) -> jax.Array:
    B, _, H, W = x.shape
    hr, hi, hs, wrt, wit, wst = _separable_constants(H, W)

    cap = _vmem_capacity_bytes()
    const_bytes = 3 * (H * H + W * W) * 4               # single-buffered
    per_image = 2 * H * W * 4
    budget = max(16 << 20, cap - (12 << 20)) - const_bytes
    cap_images = max(1, budget // (8 * per_image))
    bb = int(min(cap_images, 8, B))      # small static unroll for stage B
    while B % bb != 0:                   # divisor of B -> no padding needed
        bb -= 1

    grid = (B // bb,)
    x_spec = pl.BlockSpec((bb, 2, H, W), lambda b: (b, 0, 0, 0))
    o_spec = pl.BlockSpec((bb, 2, H, W), lambda b: (b, 0, 0, 0))
    w_spec = _const_spec((W, W), lambda b: (0, 0))
    h_spec = _const_spec((H, H), lambda b: (0, 0))

    tile_bytes = bb * per_image
    est = 7 * tile_bytes + const_bytes + (6 << 20)
    vmem_limit = int(min(cap - (4 << 20), max(32 << 20, est)))

    return pl.pallas_call(
        _separable_kernel,
        out_shape=jax.ShapeDtypeStruct((B, 2, H, W), jnp.float32),
        grid=grid,
        in_specs=[x_spec, w_spec, w_spec, w_spec, h_spec, h_spec, h_spec],
        out_specs=o_spec,
        scratch_shapes=[pltpu.VMEM((bb, H, W), jnp.float32),
                        pltpu.VMEM((bb, H, W), jnp.float32)],
        compiler_params=pltpu.CompilerParams(
            dimension_semantics=("parallel",),
            vmem_limit_bytes=vmem_limit),
        cost_estimate=pl.CostEstimate(
            flops=int(6 * B * H * W * (H + W)),
            transcendentals=0,
            bytes_accessed=int(2 * B * per_image + const_bytes)),
    )(x, wrt, wit, wst, hr, hi, hs)


# ----------------------------------------------------------------------------
# Public entry point.
# ----------------------------------------------------------------------------
def freq_to_space(x: jax.Array, *, force_separable: bool = False) -> jax.Array:
    """x: (B, C>=2, H, W); channels 0/1 = real/imag. Returns (B, 2, H, W)."""
    B, C, H, W = x.shape
    assert C >= 2, "expected at least 2 channels (real, imag)"
    if C > 2:
        x = x[:, :2]
    x = x.astype(jnp.float32)
    if force_separable or (H * W > 1024):
        return _freq_to_space_separable(x)
    return _freq_to_space_kron(x)


# ----------------------------------------------------------------------------
# Reference (host-side float64 numpy FFT, matches torch's shift conventions).
# ----------------------------------------------------------------------------
def _reference_np(x) -> np.ndarray:
    xn = np.asarray(x, dtype=np.float64)
    z = xn[:, 0, :, :] + 1j * xn[:, 1, :, :]
    im = np.fft.fftshift(
        np.fft.ifft2(np.fft.ifftshift(z, axes=(-2, -1)), norm="ortho"),
        axes=(-2, -1))
    return np.stack([im.real, im.imag], axis=1).astype(np.float32)


if __name__ == "__main__":
    f2s = jax.jit(freq_to_space, static_argnames=("force_separable",))

    # Primary shape implied by the module: (B=2, C=2(real/imag), H=16, W=16).
    x = jax.random.normal(jax.random.PRNGKey(0), (2, 2, 16, 16), jnp.float32)
    ref = _reference_np(x)

    out = jax.block_until_ready(f2s(x))                 # Kronecker path
    assert out.shape == (2, 2, 16, 16)
    assert out.dtype == jnp.float32
    np.testing.assert_allclose(np.asarray(out), ref, rtol=1e-3, atol=1e-3)

    out_sep = jax.block_until_ready(f2s(x, force_separable=True))
    np.testing.assert_allclose(np.asarray(out_sep), ref, rtol=1e-3, atol=1e-3)

    # Odd / non-square sizes exercise the ifftshift/fftshift fold (reviewer
    # flagged that even sizes alone would not catch a swapped roll amount).
    x2 = jax.random.normal(jax.random.PRNGKey(1), (3, 2, 15, 12), jnp.float32)
    ref2 = _reference_np(x2)
    np.testing.assert_allclose(np.asarray(jax.block_until_ready(f2s(x2))),
                               ref2, rtol=1e-3, atol=1e-3)
    np.testing.assert_allclose(
        np.asarray(jax.block_until_ready(f2s(x2, force_separable=True))),
        ref2, rtol=1e-3, atol=1e-3)

    print("KERNEL_OK")
</pallas_src>

<mosaic_0001>
module attributes {stable_mosaic.version = 11 : i64} {
  func.func @_kron_kernel(%arg0: i32, %arg1: memref<2x512xf32, #tpu.memory_space<vmem>>, %arg2: memref<256x256xf32, #tpu.memory_space<vmem>>, %arg3: memref<256x256xf32, #tpu.memory_space<vmem>>, %arg4: memref<256x256xf32, #tpu.memory_space<vmem>>, %arg5: memref<2x512xf32, #tpu.memory_space<vmem>>) attributes {dimension_semantics = [#tpu.dimension_semantics<parallel>], iteration_bounds = array<i64: 1>, scalar_prefetch = 0 : i64, scratch_operands = 0 : i64, tpu.core_type = #tpu.core_type<tc>, window_params = [{transform_indices = @transform_0, window_bounds = array<i64: 2, 512>}, {pipeline_mode = #tpu.pipeline_mode<synchronous>, transform_indices = @transform_1, window_bounds = array<i64: 256, 256>}, {pipeline_mode = #tpu.pipeline_mode<synchronous>, transform_indices = @transform_2, window_bounds = array<i64: 256, 256>}, {pipeline_mode = #tpu.pipeline_mode<synchronous>, transform_indices = @transform_3, window_bounds = array<i64: 256, 256>}, {transform_indices = @transform_4, window_bounds = array<i64: 2, 512>}]} {
    %c0 = arith.constant 0 : index
    %c0_0 = arith.constant 0 : index
    %0 = vector.load %arg1[%c0, %c0_0] : memref<2x512xf32, #tpu.memory_space<vmem>>, vector<2x256xf32>
    %c0_1 = arith.constant 0 : index
    %c256 = arith.constant 256 : index
    %1 = vector.load %arg1[%c0_1, %c256] : memref<2x512xf32, #tpu.memory_space<vmem>>, vector<2x256xf32>
    %c0_2 = arith.constant 0 : index
    %c0_3 = arith.constant 0 : index
    %2 = vector.load %arg2[%c0_2, %c0_3] : memref<256x256xf32, #tpu.memory_space<vmem>>, vector<256x256xf32>
    %cst = arith.constant dense<0.000000e+00> : vector<2x256xf32>
    %3 = tpu.matmul %0, %2, %cst {dimension_numbers = #tpu.dot_dimension_numbers<[1], [0], [0], [1], [0, 0, 1, 1], [], []>} : vector<2x256xf32>, vector<256x256xf32>, vector<2x256xf32> -> vector<2x256xf32>
    %c0_4 = arith.constant 0 : index
    %c0_5 = arith.constant 0 : index
    %4 = vector.load %arg3[%c0_4, %c0_5] : memref<256x256xf32, #tpu.memory_space<vmem>>, vector<256x256xf32>
    %cst_6 = arith.constant dense<0.000000e+00> : vector<2x256xf32>
    %5 = tpu.matmul %1, %4, %cst_6 {dimension_numbers = #tpu.dot_dimension_numbers<[1], [0], [0], [1], [0, 0, 1, 1], [], []>} : vector<2x256xf32>, vector<256x256xf32>, vector<2x256xf32> -> vector<2x256xf32>
    %6 = arith.addf %0, %1 : vector<2x256xf32>
    %c0_7 = arith.constant 0 : index
    %c0_8 = arith.constant 0 : index
    %7 = vector.load %arg4[%c0_7, %c0_8] : memref<256x256xf32, #tpu.memory_space<vmem>>, vector<256x256xf32>
    %cst_9 = arith.constant dense<0.000000e+00> : vector<2x256xf32>
    %8 = tpu.matmul %6, %7, %cst_9 {dimension_numbers = #tpu.dot_dimension_numbers<[1], [0], [0], [1], [0, 0, 1, 1], [], []>} : vector<2x256xf32>, vector<256x256xf32>, vector<2x256xf32> -> vector<2x256xf32>
    %9 = arith.subf %3, %5 : vector<2x256xf32>
    %c0_10 = arith.constant 0 : index
    %c0_11 = arith.constant 0 : index
    %10 = vector.load %arg5[%c0_10, %c0_11] : memref<2x512xf32, #tpu.memory_space<vmem>>, vector<2x256xf32>
    tpu.vector_store %arg5[%c0_10, %c0_11], %9 {strides = array<i32>} : memref<2x512xf32, #tpu.memory_space<vmem>>, vector<2x256xf32>,
    %11 = arith.subf %8, %3 : vector<2x256xf32>
    %12 = arith.subf %11, %5 : vector<2x256xf32>
    %c0_12 = arith.constant 0 : index
    %c256_13 = arith.constant 256 : index
    %13 = vector.load %arg5[%c0_12, %c256_13] : memref<2x512xf32, #tpu.memory_space<vmem>>, vector<2x256xf32>
    tpu.vector_store %arg5[%c0_12, %c256_13], %12 {strides = array<i32>} : memref<2x512xf32, #tpu.memory_space<vmem>>, vector<2x256xf32>,
    return
  }
  func.func @transform_0(%arg0: i32) -> (i32, i32) {
    %c0_i32 = arith.constant 0 : i32
    %c0_i32_0 = arith.constant 0 : i32
    return %arg0, %c0_i32 : i32, i32
  }
  func.func @transform_1(%arg0: i32) -> (i32, i32) {
    %c0_i32 = arith.constant 0 : i32
    %c0_i32_0 = arith.constant 0 : i32
    %c0_i32_1 = arith.constant 0 : i32
    return %c0_i32, %c0_i32_0 : i32, i32
  }
  func.func @transform_2(%arg0: i32) -> (i32, i32) {
    %c0_i32 = arith.constant 0 : i32
    %c0_i32_0 = arith.constant 0 : i32
    %c0_i32_1 = arith.constant 0 : i32
    return %c0_i32, %c0_i32_0 : i32, i32
  }
  func.func @transform_3(%arg0: i32) -> (i32, i32) {
    %c0_i32 = arith.constant 0 : i32
    %c0_i32_0 = arith.constant 0 : i32
    %c0_i32_1 = arith.constant 0 : i32
    return %c0_i32, %c0_i32_0 : i32, i32
  }
  func.func @transform_4(%arg0: i32) -> (i32, i32) {
    %c0_i32 = arith.constant 0 : i32
    %c0_i32_0 = arith.constant 0 : i32
    return %arg0, %c0_i32 : i32, i32
  }
}

</mosaic_0001>

<bundles_post_ra>
// kernel: freq_to_space.1
= control target key start
LH: loop header
LB: loop body
LE: loop exit
PB: predicated region body
PF: predicated region fallthrough
CT: control target
= control target key end

     0   :  { %9 = vsyncpa [#allocation3], 0  ;;  %s928_s0 = inlined_call_operand.vmem [shape: f32[2,512], index: 0, kind: input, shape index: {}]   ;;  %s929_s1 = inlined_call_operand.hbm [shape: f32[256,256], index: 1, kind: input, shape index: {}]   ;;  %s930_s2 = inlined_call_operand.hbm [shape: f32[256,256], index: 2, kind: input, shape index: {}]   ;;  %s931_s3 = inlined_call_operand.hbm [shape: f32[256,256], index: 3, kind: input, shape index: {}]   ;;  %s932_s4 = inlined_call_operand.vmem [shape: f32[2,512], index: 4, kind: output, shape index: {}]  }
   0x1   :  { %10 = vsyncpa [#allocation5], 0  ;;  %s805_s15 = smov [#allocation4]   ;;  %s806_s17 = smov [#allocation2]  }
   0x2   :  { %s30_s16 = sshll.u32 %s805_s15, 4  ;;  %s18_s18 = sshll.u32 %s806_s17, 4  ;;  %s31_s16 = int_to_ptr.vmem [resolvable:$true] %s30_s16  ;;  %s836_s18 = int_to_ptr.vmem [resolvable:$true] %s18_s18 }
   0x3   :  { %s735_s21 = scalar_lea.hbm %s930_s2, 8192 }
   0x4   :  { %p736_p0 = scmp.ne.s32.totalorder %s930_s2, %s735_s21  ;;  %p739_p1 = scmp.lt.u32.totalorder %s735_s21, %s930_s2 }
   0x6   :  { %p741_p2 = pnand %p739_p1, %p736_p0 }
   0x8   :  { %744 = shalt.err (!%p741_p2)
}
   0x9   :  { %s745_s26 = scalar_lea.vmem %s31_s16, 8192  ;;  %p750_p4 = scmp.lt.s32.totalorder %s31_s16, %s31_s16 }
   0xa   :  { %p746_p3 = scmp.ne.s32.totalorder %s31_s16, %s745_s26  ;;  %p751_p5 = scmp.lt.s32.totalorder %s745_s26, %s745_s26 }
   0xc   :  { %p752_p6 = por %p751_p5, %p750_p4 }
   0xe   :  { %p753_p7 = pnand %p752_p6, %p746_p3 }
  0x10   :  { %756 = shalt.err (!%p753_p7)
}
  0x11   :  { %s807_s27 = smov 256   ;;  %s808_s28 = smov 16  }
  0x12   :  { %36 = dma.hbm_to_vmem [thread:$0]  %s930_s2, 8192, %s31_s16, [#allocation5], %s807_s27, %s807_s27, %s808_s28  }
  0x13   :  { %s757_s7 = scalar_lea.hbm %s929_s1, 8192 }
  0x14   :  { %p758_p8 = scmp.ne.s32.totalorder %s929_s1, %s757_s7  ;;  %p761_p9 = scmp.lt.u32.totalorder %s757_s7, %s929_s1 }
  0x16   :  { %p763_p10 = pnand %p761_p9, %p758_p8 }
  0x18   :  { %766 = shalt.err (!%p763_p10)
}
  0x19   :  { %s767_s12 = scalar_lea.vmem %s836_s18, 8192  ;;  %p772_p12 = scmp.lt.s32.totalorder %s836_s18, %s836_s18 }
  0x1a   :  { %p768_p11 = scmp.ne.s32.totalorder %s836_s18, %s767_s12  ;;  %p773_p13 = scmp.lt.s32.totalorder %s767_s12, %s767_s12 }
  0x1c   :  { %p774_p0 = por %p773_p13, %p772_p12 }
  0x1e   :  { %p775_p1 = pnand %p774_p0, %p768_p11 }
  0x20   :  { %778 = shalt.err (!%p775_p1)
}
  0x21   :  { %24 = dma.hbm_to_vmem [thread:$0]  %s929_s1, 8192, %s836_s18, [#allocation3], %s807_s27, %s807_s27, %s808_s28  }
  0x22   :  { %s809_s14 = smov [#allocation6]   ;;  %s779_s19 = scalar_lea.hbm %s931_s3, 8192 }
  0x23   :  { %s42_s15 = sshll.u32 %s809_s14, 4  ;;  %p780_p2 = scmp.ne.s32.totalorder %s931_s3, %s779_s19  ;;  %s43_s15 = int_to_ptr.vmem [resolvable:$true] %s42_s15 }
  0x24   :  { %p783_p3 = scmp.lt.u32.totalorder %s779_s19, %s931_s3 }
  0x26   :  { %p785_p4 = pnand %p783_p3, %p780_p2 }
  0x28   :  { %788 = shalt.err (!%p785_p4)
}
  0x29   :  { %s789_s24 = scalar_lea.vmem %s43_s15, 8192  ;;  %p794_p6 = scmp.lt.s32.totalorder %s43_s15, %s43_s15 }
  0x2a   :  { %p790_p5 = scmp.ne.s32.totalorder %s43_s15, %s789_s24  ;;  %p795_p7 = scmp.lt.s32.totalorder %s789_s24, %s789_s24 }
  0x2c   :  { %p796_p8 = por %p795_p7, %p794_p6 }
  0x2e   :  { %p797_p9 = pnand %p796_p8, %p790_p5 }
  0x30   :  { %800 = shalt.err (!%p797_p9)
}
  0x31   :  { %48 = dma.hbm_to_vmem [thread:$0]  %s931_s3, 8192, %s43_s15, [#allocation5], %s807_s27, %s807_s27, %s808_s28  }
  0x32   :  { %801 = dma.done.wait [#allocation3], 8192  }
  0x33   :  { %802 = vsyncadd [#allocation3], 4294959104 }
  0x34   :  { %803 = dma.done.wait [#allocation5], 16384  }
  0x35   :  { %804 = vsyncadd [#allocation5], 4294950912  ;;  %v61_v0 = vld [vmem:[#allocation2 + $0x8] sm:$0xff]  ;;  %v63_v1 = vld [vmem:[#allocation2 + $0x18] sm:$0xff] }
  0x36   :  { %v207_v2 = vld [vmem:[#allocation4 + $0x8] sm:$0xff]  ;;  %v537_v3 = vpack.c.bf16 %v63_v1, %v61_v0  ;;  %v209_v4 = vld [vmem:[#allocation4 + $0x18] sm:$0xff]  ;;  %v60_v5 = vld [vmem:[#allocation2] sm:$0xff] }
  0x37   :  { %v62_v6 = vld [vmem:[#allocation2 + $0x10] sm:$0xff]  ;;  %v601_v7 = vpack.c.bf16 %v209_v4, %v207_v2  ;;  %v206_v9 = vld [vmem:[#allocation4] sm:$0xff]  ;;  %v65_v11 = vld [vmem:[#allocation2 + $0x28] sm:$0xff] }
  0x38   :  { %v539_v8 = vpack.c.bf16 %v62_v6, %v60_v5  ;;  %v208_v10 = vld [vmem:[#allocation4 + $0x10] sm:$0xff]  ;;  %538 = vmatprep.subr.bf16.mxu0 %v537_v3  ;;  %v67_v13 = vld [vmem:[#allocation2 + $0x38] sm:$0xff]  ;;  %v211_v14 = vld [vmem:[#allocation4 + $0x28] sm:$0xff] }
  0x39   :  { %v603_v12 = vpack.c.bf16 %v208_v10, %v206_v9  ;;  %v213_v15 = vld [vmem:[#allocation4 + $0x38] sm:$0xff]  ;;  %602 = vmatprep.subr.bf16.mxu1 %v601_v7  ;;  %v541_v16 = vpack.c.bf16 %v67_v13, %v65_v11  ;;  %v64_v18 = vld [vmem:[#allocation2 + $0x20] sm:$0xff]  ;;  %v66_v19 = vld [vmem:[#allocation2 + $0x30] sm:$0xff] }
  0x3a   :  { %540 = vmatpush1.bf16.msra.mxu0 %v539_v8  ;;  %v605_v17 = vpack.c.bf16 %v213_v15, %v211_v14  ;;  %v210_v20 = vld [vmem:[#allocation4 + $0x20] sm:$0xff]  ;;  %v543_v21 = vpack.c.bf16 %v66_v19, %v64_v18  ;;  %v212_v22 = vld [vmem:[#allocation4 + $0x30] sm:$0xff]  ;;  %v69_v23 = vld [vmem:[#allocation2 + $0x48] sm:$0xff] }
  0x3b   :  { %604 = vmatpush1.bf16.msra.mxu1 %v603_v12  ;;  %v71_v24 = vld [vmem:[#allocation2 + $0x58] sm:$0xff]  ;;  %542 = vmatprep.subr.bf16.mxu0 %v541_v16  ;;  %v607_v25 = vpack.c.bf16 %v212_v22, %v210_v20  ;;  %v215_v27 = vld [vmem:[#allocation4 + $0x48] sm:$0xff]  ;;  %v68_v29 = vld [vmem:[#allocation2 + $0x40] sm:$0xff] }
  0x3c   :  { %606 = vmatprep.subr.bf16.mxu1 %v605_v17  ;;  %v545_v26 = vpack.c.bf16 %v71_v24, %v69_v23  ;;  %v217_v28 = vld [vmem:[#allocation4 + $0x58] sm:$0xff]  ;;  %v70_v31 = vld [vmem:[#allocation2 + $0x50] sm:$0xff]  ;;  %v214_v32 = vld [vmem:[#allocation4 + $0x40] sm:$0xff] }
  0x3d   :  { %v609_v30 = vpack.c.bf16 %v217_v28, %v215_v27  ;;  %v216_v33 = vld [vmem:[#allocation4 + $0x50] sm:$0xff]  ;;  %v547_v34 = vpack.c.bf16 %v70_v31, %v68_v29  ;;  %v73_v35 = vld [vmem:[#allocation2 + $0x68] sm:$0xff]  ;;  %v75_v36 = vld [vmem:[#allocation2 + $0x78] sm:$0xff] }
  0x3e   :  { %544 = vmatpush1.bf16.msra.mxu0 %v543_v21  ;;  %v219_v37 = vld [vmem:[#allocation4 + $0x68] sm:$0xff]  ;;  %v611_v38 = vpack.c.bf16 %v216_v33, %v214_v32  ;;  %v549_v39 = vpack.c.bf16 %v75_v36, %v73_v35  ;;  %v221_v40 = vld [vmem:[#allocation4 + $0x78] sm:$0xff]  ;;  %v72_v41 = vld [vmem:[#allocation2 + $0x60] sm:$0xff] }
  0x3f   :  { %608 = vmatpush1.bf16.msra.mxu1 %v607_v25  ;;  %546 = vmatprep.subr.bf16.mxu0 %v545_v26  ;;  %v74_v42 = vld [vmem:[#allocation2 + $0x70] sm:$0xff]  ;;  %v613_v43 = vpack.c.bf16 %v221_v40, %v219_v37  ;;  %v218_v44 = vld [vmem:[#allocation4 + $0x60] sm:$0xff]  ;;  %v77_v46 = vld [vmem:[#allocation2 + $0x88] sm:$0xff] }
  0x40   :  { %610 = vmatprep.subr.bf16.mxu1 %v609_v30  ;;  %v220_v45 = vld [vmem:[#allocation4 + $0x70] sm:$0xff]  ;;  %v79_v47 = vld [vmem:[#allocation2 + $0x98] sm:$0xff]  ;;  %v223_v48 = vld [vmem:[#allocation4 + $0x88] sm:$0xff]  ;;  %v551_v50 = vpack.c.bf16 %v74_v42, %v72_v41 }
  0x41   :  { %v225_v49 = vld [vmem:[#allocation4 + $0x98] sm:$0xff]  ;;  %v615_v51 = vpack.c.bf16 %v220_v45, %v218_v44  ;;  %v553_v52 = vpack.c.bf16 %v79_v47, %v77_v46  ;;  %v76_v53 = vld [vmem:[#allocation2 + $0x80] sm:$0xff]  ;;  %v78_v54 = vld [vmem:[#allocation2 + $0x90] sm:$0xff]  ;;  %v810_v46 = vmov 1983009808  }
  0x42   :  { %548 = vmatpush1.bf16.msra.mxu0 %v547_v34  ;;  %v222_v55 = vld [vmem:[#allocation4 + $0x80] sm:$0xff]  ;;  %v617_v56 = vpack.c.bf16 %v225_v49, %v223_v48  ;;  %v224_v57 = vld [vmem:[#allocation4 + $0x90] sm:$0xff]  ;;  %v81_v58 = vld [vmem:[#allocation2 + $0xa8] sm:$0xff]  ;;  %v555_v62 = vpack.c.bf16 %v78_v54, %v76_v53  ;;  %v126_v47 = vunpack.c.l.s4 %v810_v46  ;;  %v128_v48 = vlaneseq }
  0x43   :  { %612 = vmatpush1.bf16.msra.mxu1 %v611_v38  ;;  %550 = vmatprep.subr.bf16.mxu0 %v549_v39  ;;  %v83_v59 = vld [vmem:[#allocation2 + $0xb8] sm:$0xff]  ;;  %v227_v60 = vld [vmem:[#allocation4 + $0xa8] sm:$0xff]  ;;  %v619_v63 = vpack.c.bf16 %v224_v57, %v222_v55  ;;  %v80_v1 = vld [vmem:[#allocation2 + $0xa0] sm:$0xff] }
  0x44   :  { %614 = vmatprep.subr.bf16.mxu1 %v613_v43  ;;  %v229_v61 = vld [vmem:[#allocation4 + $0xb8] sm:$0xff]  ;;  %v557_v0 = vpack.c.bf16 %v83_v59, %v81_v58  ;;  %v82_v2 = vld [vmem:[#allocation2 + $0xb0] sm:$0xff]  ;;  %v226_v3 = vld [vmem:[#allocation4 + $0xa0] sm:$0xff] }
  0x45   :  { %v621_v4 = vpack.c.bf16 %v229_v61, %v227_v60  ;;  %v228_v5 = vld [vmem:[#allocation4 + $0xb0] sm:$0xff]  ;;  %v85_v6 = vld [vmem:[#allocation2 + $0xc8] sm:$0xff]  ;;  %v87_v7 = vld [vmem:[#allocation2 + $0xd8] sm:$0xff]  ;;  %v559_v10 = vpack.c.bf16 %v82_v2, %v80_v1  ;;  %v127_v61 = vunpack.c.0.s8 %v126_v47 }
  0x46   :  { %552 = vmatpush1.bf16.msra.mxu0 %v551_v50  ;;  %v231_v8 = vld [vmem:[#allocation4 + $0xc8] sm:$0xff]  ;;  %v233_v9 = vld [vmem:[#allocation4 + $0xd8] sm:$0xff]  ;;  %v623_v11 = vpack.c.bf16 %v228_v5, %v226_v3  ;;  %v561_v12 = vpack.c.bf16 %v87_v7, %v85_v6  ;;  %v84_v13 = vld [vmem:[#allocation2 + $0xc0] sm:$0xff] }
  0x47   :  { %616 = vmatpush1.bf16.msra.mxu1 %v615_v51  ;;  %554 = vmatprep.subr.bf16.mxu0 %v553_v52  ;;  %v86_v14 = vld [vmem:[#allocation2 + $0xd0] sm:$0xff]  ;;  %v230_v15 = vld [vmem:[#allocation4 + $0xc0] sm:$0xff]  ;;  %v625_v16 = vpack.c.bf16 %v233_v9, %v231_v8  ;;  %v89_v18 = vld [vmem:[#allocation2 + $0xe8] sm:$0xff] }
  0x48   :  { %618 = vmatprep.subr.bf16.mxu1 %v617_v56  ;;  %v232_v17 = vld [vmem:[#allocation4 + $0xd0] sm:$0xff]  ;;  %v91_v19 = vld [vmem:[#allocation2 + $0xf8] sm:$0xff]  ;;  %v235_v20 = vld [vmem:[#allocation4 + $0xe8] sm:$0xff]  ;;  %v563_v22 = vpack.c.bf16 %v86_v14, %v84_v13 }
  0x49   :  { %v237_v21 = vld [vmem:[#allocation4 + $0xf8] sm:$0xff]  ;;  %v627_v23 = vpack.c.bf16 %v232_v17, %v230_v15  ;;  %v565_v24 = vpack.c.bf16 %v91_v19, %v89_v18  ;;  %v88_v25 = vld [vmem:[#allocation2 + $0xe0] sm:$0xff]  ;;  %v90_v26 = vld [vmem:[#allocation2 + $0xf0] sm:$0xff] }
  0x4a   :  { %556 = vmatpush1.bf16.msra.mxu0 %v555_v62  ;;  %v234_v27 = vld [vmem:[#allocation4 + $0xe0] sm:$0xff]  ;;  %v629_v28 = vpack.c.bf16 %v237_v21, %v235_v20  ;;  %v236_v29 = vld [vmem:[#allocation4 + $0xf0] sm:$0xff]  ;;  %v93_v30 = vld [vmem:[#allocation2 + $0x108] sm:$0xff]  ;;  %v567_v34 = vpack.c.bf16 %v90_v26, %v88_v25  ;;  %v129_v62 = vshrl.u32 %v128_v48, 7 }
  0x4b   :  { %620 = vmatpush1.bf16.msra.mxu1 %v619_v63  ;;  %558 = vmatprep.subr.bf16.mxu0 %v557_v0  ;;  %v95_v31 = vld [vmem:[#allocation2 + $0x118] sm:$0xff]  ;;  %v239_v32 = vld [vmem:[#allocation4 + $0x108] sm:$0xff]  ;;  %v631_v35 = vpack.c.bf16 %v236_v29, %v234_v27  ;;  %v92_v37 = vld [vmem:[#allocation2 + $0x100] sm:$0xff] }
  0x4c   :  { %622 = vmatprep.subr.bf16.mxu1 %v621_v4  ;;  %v241_v33 = vld [vmem:[#allocation4 + $0x118] sm:$0xff]  ;;  %v569_v36 = vpack.c.bf16 %v95_v31, %v93_v30  ;;  %v94_v38 = vld [vmem:[#allocation2 + $0x110] sm:$0xff]  ;;  %v238_v39 = vld [vmem:[#allocation4 + $0x100] sm:$0xff] }
  0x4d   :  { %v633_v40 = vpack.c.bf16 %v241_v33, %v239_v32  ;;  %v240_v41 = vld [vmem:[#allocation4 + $0x110] sm:$0xff]  ;;  %v97_v42 = vld [vmem:[#allocation2 + $0x128] sm:$0xff]  ;;  %v99_v43 = vld [vmem:[#allocation2 + $0x138] sm:$0xff]  ;;  %v571_v49 = vpack.c.bf16 %v94_v38, %v92_v37 }
  0x4e   :  { %560 = vmatpush1.bf16.msra.mxu0 %v559_v10  ;;  %v243_v44 = vld [vmem:[#allocation4 + $0x128] sm:$0xff]  ;;  %v245_v45 = vld [vmem:[#allocation4 + $0x138] sm:$0xff]  ;;  %v635_v50 = vpack.c.bf16 %v240_v41, %v238_v39  ;;  %v573_v51 = vpack.c.bf16 %v99_v43, %v97_v42  ;;  %v96_v52 = vld [vmem:[#allocation2 + $0x120] sm:$0xff] }
  0x4f   :  { %624 = vmatpush1.bf16.msra.mxu1 %v623_v11  ;;  %562 = vmatprep.subr.bf16.mxu0 %v561_v12  ;;  %v98_v53 = vld [vmem:[#allocation2 + $0x130] sm:$0xff]  ;;  %v242_v54 = vld [vmem:[#allocation4 + $0x120] sm:$0xff]  ;;  %v637_v55 = vpack.c.bf16 %v245_v45, %v243_v44  ;;  %v101_v57 = vld [vmem:[#allocation2 + $0x148] sm:$0xff]  ;;  %v888_v11 = vsub.s32 %v127_v61, %v129_v62 }
  0x50   :  { %626 = vmatprep.subr.bf16.mxu1 %v625_v16  ;;  %v244_v56 = vld [vmem:[#allocation4 + $0x130] sm:$0xff]  ;;  %v103_v58 = vld [vmem:[#allocation2 + $0x158] sm:$0xff]  ;;  %v247_v59 = vld [vmem:[#allocation4 + $0x148] sm:$0xff]  ;;  %v575_v63 = vpack.c.bf16 %v98_v53, %v96_v52 }
  0x51   :  { %v249_v60 = vld [vmem:[#allocation4 + $0x158] sm:$0xff]  ;;  %v639_v0 = vpack.c.bf16 %v244_v56, %v242_v54  ;;  %v577_v1 = vpack.c.bf16 %v103_v58, %v101_v57  ;;  %v100_v2 = vld [vmem:[#allocation2 + $0x140] sm:$0xff]  ;;  %v102_v3 = vld [vmem:[#allocation2 + $0x150] sm:$0xff] }
  0x52   :  { %564 = vmatpush1.bf16.msra.mxu0 %v563_v22  ;;  %v246_v4 = vld [vmem:[#allocation4 + $0x140] sm:$0xff]  ;;  %v641_v5 = vpack.c.bf16 %v249_v60, %v247_v59  ;;  %v248_v6 = vld [vmem:[#allocation4 + $0x150] sm:$0xff]  ;;  %v105_v7 = vld [vmem:[#allocation2 + $0x168] sm:$0xff]  ;;  %v579_v12 = vpack.c.bf16 %v102_v3, %v100_v2 }
  0x53   :  { %628 = vmatpush1.bf16.msra.mxu1 %v627_v23  ;;  %566 = vmatprep.subr.bf16.mxu0 %v565_v24  ;;  %v107_v8 = vld [vmem:[#allocation2 + $0x178] sm:$0xff]  ;;  %v251_v9 = vld [vmem:[#allocation4 + $0x168] sm:$0xff]  ;;  %v104_v13 = vld [vmem:[#allocation2 + $0x160] sm:$0xff]  ;;  %v643_v14 = vpack.c.bf16 %v248_v6, %v246_v4 }
  0x54   :  { %630 = vmatprep.subr.bf16.mxu1 %v629_v28  ;;  %v253_v10 = vld [vmem:[#allocation4 + $0x178] sm:$0xff]  ;;  %v581_v15 = vpack.c.bf16 %v107_v8, %v105_v7  ;;  %v106_v16 = vld [vmem:[#allocation2 + $0x170] sm:$0xff]  ;;  %v250_v17 = vld [vmem:[#allocation4 + $0x160] sm:$0xff] }
  0x55   :  { %v252_v18 = vld [vmem:[#allocation4 + $0x170] sm:$0xff]  ;;  %v645_v19 = vpack.c.bf16 %v253_v10, %v251_v9  ;;  %v109_v20 = vld [vmem:[#allocation2 + $0x188] sm:$0xff]  ;;  %v111_v21 = vld [vmem:[#allocation2 + $0x198] sm:$0xff]  ;;  %v583_v27 = vpack.c.bf16 %v106_v16, %v104_v13 }
  0x56   :  { %568 = vmatpush1.bf16.msra.mxu0 %v567_v34  ;;  %v893_v22 = vld [vmem:[%s928_s0] sm:$0xf]  ;;  %v255_v23 = vld [vmem:[#allocation4 + $0x188] sm:$0xff]  ;;  %v257_v24 = vld [vmem:[#allocation4 + $0x198] sm:$0xff]  ;;  %v647_v29 = vpack.c.bf16 %v252_v18, %v250_v17  ;;  %v585_v30 = vpack.c.bf16 %v111_v21, %v109_v20 }
  0x57   :  { %632 = vmatpush1.bf16.msra.mxu1 %v631_v35  ;;  %570 = vmatprep.subr.bf16.mxu0 %v569_v36  ;;  %v897_v25 = vrot.slane %v893_v22, %v888_v11  ;;  %v902_v26 = vld [vmem:[%s928_s0 + $0x4] sm:$0xf]  ;;  %v110_v32 = vld [vmem:[#allocation2 + $0x190] sm:$0xff]  ;;  %v649_v35 = vpack.c.bf16 %v257_v24, %v255_v23  ;;  %v113_v37 = vld [vmem:[#allocation2 + $0x1a8] sm:$0xff] }
  0x58   :  { %634 = vmatprep.subr.bf16.mxu1 %v633_v40  ;;  %v906_v28 = vrot.slane %v902_v26, %v888_v11  ;;  %v108_v31 = vld [vmem:[#allocation2 + $0x180] sm:$0xff]  ;;  %v256_v36 = vld [vmem:[#allocation4 + $0x190] sm:$0xff]  ;;  %v115_v38 = vld [vmem:[#allocation2 + $0x1b8] sm:$0xff]  ;;  %v352_v8 = vadd.f32 %v902_v26, %v893_v22 }
  0x59   :  { %v254_v33 = vld [vmem:[#allocation4 + $0x180] sm:$0xff]  ;;  %v132_v34 = vcombine.high %v897_v25, %v897_v25  ;;  %v259_v40 = vld [vmem:[#allocation4 + $0x1a8] sm:$0xff]  ;;  %v261_v41 = vld [vmem:[#allocation4 + $0x1b8] sm:$0xff]  ;;  %v587_v42 = vpack.c.bf16 %v110_v32, %v108_v31  ;;  %v589_v44 = vpack.c.bf16 %v115_v38, %v113_v37 }
  0x5a   :  { %572 = vmatpush1.bf16.msra.mxu0 %v571_v49  ;;  %v278_v39 = vcombine.high %v906_v28, %v906_v28  ;;  %v651_v43 = vpack.c.bf16 %v256_v36, %v254_v33  ;;  %v112_v45 = vld [vmem:[#allocation2 + $0x1a0] sm:$0xff]  ;;  %v114_v46 = vld [vmem:[#allocation2 + $0x1b0] sm:$0xff]  ;;  %v653_v48 = vpack.c.bf16 %v261_v41, %v259_v40  ;;  %v263_v52 = vld [vmem:[#allocation4 + $0x1c8] sm:$0xff] }
  0x5b   :  { %636 = vmatpush1.bf16.msra.mxu1 %v635_v50  ;;  %574 = vmatprep.subr.bf16.mxu0 %v573_v51  ;;  %v258_v47 = vld [vmem:[#allocation4 + $0x1a0] sm:$0xff]  ;;  %v260_v49 = vld [vmem:[#allocation4 + $0x1b0] sm:$0xff]  ;;  %v117_v50 = vld [vmem:[#allocation2 + $0x1c8] sm:$0xff]  ;;  %v591_v54 = vpack.c.bf16 %v114_v46, %v112_v45 }
  0x5c   :  { %638 = vmatprep.subr.bf16.mxu1 %v637_v55  ;;  %199 = vmatprep.mubr.f32.mxu0 %v132_v34  ;;  %v119_v51 = vld [vmem:[#allocation2 + $0x1d8] sm:$0xff]  ;;  %v655_v55 = vpack.c.bf16 %v260_v49, %v258_v47  ;;  %v116_v57 = vld [vmem:[#allocation2 + $0x1c0] sm:$0xff]  ;;  %v118_v58 = vld [vmem:[#allocation2 + $0x1d0] sm:$0xff] }
  0x5d   :  { %345 = vmatprep.mubr.f32.mxu1 %v278_v39  ;;  %v265_v53 = vld [vmem:[#allocation4 + $0x1d8] sm:$0xff]  ;;  %v593_v56 = vpack.c.bf16 %v119_v51, %v117_v50  ;;  %v262_v59 = vld [vmem:[#allocation4 + $0x1c0] sm:$0xff]  ;;  %v264_v61 = vld [vmem:[#allocation4 + $0x1d0] sm:$0xff]  ;;  %v595_v2 = vpack.c.bf16 %v118_v58, %v116_v57 }
  0x5e   :  { %576 = vmatpush1.bf16.msra.mxu0 %v575_v63  ;;  %v657_v60 = vpack.c.bf16 %v265_v53, %v263_v52  ;;  %v121_v62 = vld [vmem:[#allocation2 + $0x1e8] sm:$0xff]  ;;  %v123_v63 = vld [vmem:[#allocation2 + $0x1f8] sm:$0xff]  ;;  %v659_v3 = vpack.c.bf16 %v264_v61, %v262_v59  ;;  %v122_v6 = vld [vmem:[#allocation2 + $0x1f0] sm:$0xff] }
  0x5f   :  { %640 = vmatpush1.bf16.msra.mxu1 %v639_v0  ;;  %578 = vmatprep.subr.bf16.mxu0 %v577_v1  ;;  %v267_v0 = vld [vmem:[#allocation4 + $0x1e8] sm:$0xff]  ;;  %v269_v1 = vld [vmem:[#allocation4 + $0x1f8] sm:$0xff]  ;;  %v597_v4 = vpack.c.bf16 %v123_v63, %v121_v62  ;;  %v266_v7 = vld [vmem:[#allocation4 + $0x1e0] sm:$0xff] }
  0x60   :  { %642 = vmatprep.subr.bf16.mxu1 %v641_v5  ;;  %v120_v5 = vld [vmem:[#allocation2 + $0x1e0] sm:$0xff]  ;;  %v661_v9 = vpack.c.bf16 %v269_v1, %v267_v0  ;;  %v268_v10 = vld [vmem:[#allocation4 + $0x1f0] sm:$0xff]  ;;  %v356_v13 = vld [vmem:[#allocation6 + $0x18] sm:$0xff] }
  0x61   :  { %v353_v17 = vld [vmem:[#allocation6] sm:$0xff]  ;;  %v355_v18 = vld [vmem:[#allocation6 + $0x10] sm:$0xff]  ;;  %v358_v20 = vld [vmem:[#allocation6 + $0x28] sm:$0xff] }
  0x62   :  { %580 = vmatpush1.bf16.msra.mxu0 %v579_v12  ;;  %v354_v12 = vld [vmem:[#allocation6 + $0x8] sm:$0xff]  ;;  %v360_v21 = vld [vmem:[#allocation6 + $0x38] sm:$0xff]  ;;  %v667_v22 = vpack.c.bf16 %v355_v18, %v353_v17  ;;  %v357_v24 = vld [vmem:[#allocation6 + $0x20] sm:$0xff] }
  0x63   :  { %644 = vmatpush1.bf16.msra.mxu1 %v643_v14  ;;  %582 = vmatprep.subr.bf16.mxu0 %v581_v15  ;;  %v599_v14 = vpack.c.bf16 %v122_v6, %v120_v5  ;;  %v663_v15 = vpack.c.bf16 %v268_v10, %v266_v7  ;;  %v665_v16 = vpack.c.bf16 %v356_v13, %v354_v12  ;;  %v359_v26 = vld [vmem:[#allocation6 + $0x30] sm:$0xff]  ;;  %v361_v32 = vld [vmem:[#allocation6 + $0x40] sm:$0xff]  ;;  %v366_v34 = vld [vmem:[#allocation6 + $0x68] sm:$0xff] }
  0x64   :  { %646 = vmatprep.subr.bf16.mxu1 %v645_v19  ;;  %v915_v19 = vrot.slane %v352_v8, %v888_v11  ;;  %v669_v23 = vpack.c.bf16 %v360_v21, %v358_v20  ;;  %v671_v11 = vpack.c.bf16 %v359_v26, %v357_v24  ;;  %v363_v33 = vld [vmem:[#allocation6 + $0x50] sm:$0xff]  ;;  %v365_v38 = vld [vmem:[#allocation6 + $0x60] sm:$0xff]  ;;  %v370_v40 = vld [vmem:[#allocation6 + $0x88] sm:$0xff] }
  0x65   :  { %v675_v36 = vpack.c.bf16 %v363_v33, %v361_v32  ;;  %v367_v39 = vld [vmem:[#allocation6 + $0x70] sm:$0xff]  ;;  %v372_v41 = vld [vmem:[#allocation6 + $0x98] sm:$0xff]  ;;  %v378_v50 = vld [vmem:[#allocation6 + $0xc8] sm:$0xff] }
  0x66   :  { %584 = vmatpush1.bf16.msra.mxu0 %v583_v27  ;;  %v425_v27 = vcombine.high %v915_v19, %v915_v19  ;;  %v376_v45 = vld [vmem:[#allocation6 + $0xb8] sm:$0xff]  ;;  %v375_v49 = vld [vmem:[#allocation6 + $0xb0] sm:$0xff]  ;;  %v386_v62 = vld [vmem:[#allocation6 + $0x108] sm:$0xff] }
  0x67   :  { %648 = vmatpush1.bf16.msra.mxu1 %v647_v29  ;;  %586 = vmatprep.subr.bf16.mxu0 %v585_v30  ;;  %v362_v29 = vld [vmem:[#allocation6 + $0x48] sm:$0xff]  ;;  %v364_v30 = vld [vmem:[#allocation6 + $0x58] sm:$0xff]  ;;  %v383_v61 = vld [vmem:[#allocation6 + $0xf0] sm:$0xff] }
  0x68   :  { %650 = vmatprep.subr.bf16.mxu1 %v649_v35  ;;  %v673_v31 = vpack.c.bf16 %v364_v30, %v362_v29  ;;  %v368_v35 = vld [vmem:[#allocation6 + $0x78] sm:$0xff]  ;;  %v389_v8 = vld [vmem:[#allocation6 + $0x120] sm:$0xff]  ;;  %v394_v10 = vld [vmem:[#allocation6 + $0x148] sm:$0xff] }
  0x69   :  { %v677_v37 = vpack.c.bf16 %v368_v35, %v366_v34  ;;  %v380_v51 = vld [vmem:[#allocation6 + $0xd8] sm:$0xff]  ;;  %v398_v17 = vld [vmem:[#allocation6 + $0x168] sm:$0xff]  ;;  %v401_v30 = vld [vmem:[#allocation6 + $0x180] sm:$0xff] }
  0x6a   :  { %588 = vmatpush1.bf16.msra.mxu0 %v587_v42  ;;  %v369_v42 = vld [vmem:[#allocation6 + $0x80] sm:$0xff]  ;;  %v689_v53 = vpack.c.bf16 %v380_v51, %v378_v50  ;;  %v384_v57 = vld [vmem:[#allocation6 + $0xf8] sm:$0xff]  ;;  %v402_v24 = vld [vmem:[#allocation6 + $0x188] sm:$0xff] }
  0x6b   :  { %652 = vmatpush1.bf16.msra.mxu1 %v651_v43  ;;  %590 = vmatprep.subr.bf16.mxu0 %v589_v44  ;;  %v371_v43 = vld [vmem:[#allocation6 + $0x90] sm:$0xff]  ;;  %v374_v44 = vld [vmem:[#allocation6 + $0xa8] sm:$0xff]  ;;  %v388_v63 = vld [vmem:[#allocation6 + $0x118] sm:$0xff] }
  0x6c   :  { %654 = vmatprep.subr.bf16.mxu1 %v653_v48  ;;  %v683_v46 = vpack.c.bf16 %v371_v43, %v369_v42  ;;  %v685_v47 = vpack.c.bf16 %v376_v45, %v374_v44  ;;  %v373_v48 = vld [vmem:[#allocation6 + $0xa0] sm:$0xff]  ;;  %v697_v1 = vpack.c.bf16 %v388_v63, %v386_v62  ;;  %v392_v5 = vld [vmem:[#allocation6 + $0x138] sm:$0xff] }
  0x6d   :  { %v687_v52 = vpack.c.bf16 %v375_v49, %v373_v48  ;;  %v396_v12 = vld [vmem:[#allocation6 + $0x158] sm:$0xff]  ;;  %v405_v35 = vld [vmem:[#allocation6 + $0x1a0] sm:$0xff] }
  0x6e   :  { %592 = vmatpush1.bf16.msra.mxu0 %v591_v54  ;;  %v377_v54 = vld [vmem:[#allocation6 + $0xc0] sm:$0xff]  ;;  %v400_v18 = vld [vmem:[#allocation6 + $0x178] sm:$0xff] }
  0x6f   :  { %656 = vmatpush1.bf16.msra.mxu1 %v655_v55  ;;  %594 = vmatprep.subr.bf16.mxu0 %v593_v56  ;;  %v379_v55 = vld [vmem:[#allocation6 + $0xd0] sm:$0xff]  ;;  %v382_v56 = vld [vmem:[#allocation6 + $0xe8] sm:$0xff]  ;;  %v709_v21 = vpack.c.bf16 %v400_v18, %v398_v17  ;;  %v404_v26 = vld [vmem:[#allocation6 + $0x198] sm:$0xff] }
  0x70   :  { %658 = vmatprep.subr.bf16.mxu1 %v657_v60  ;;  %v691_v58 = vpack.c.bf16 %v379_v55, %v377_v54  ;;  %v693_v59 = vpack.c.bf16 %v384_v57, %v382_v56  ;;  %v381_v60 = vld [vmem:[#allocation6 + $0xe0] sm:$0xff]  ;;  %v713_v29 = vpack.c.bf16 %v404_v26, %v402_v24  ;;  %v408_v32 = vld [vmem:[#allocation6 + $0x1b8] sm:$0xff] }
  0x71   :  { %v695_v0 = vpack.c.bf16 %v383_v61, %v381_v60  ;;  %v416_v42 = vld [vmem:[#allocation6 + $0x1f8] sm:$0xff]  ;;  %v413_v45 = vld [vmem:[#allocation6 + $0x1e0] sm:$0xff] }
  0x72   :  { %596 = vmatpush1.bf16.msra.mxu0 %v595_v2  ;;  %v385_v2 = vld [vmem:[#allocation6 + $0x100] sm:$0xff] }
  0x73   :  { %660 = vmatpush1.bf16.msra.mxu1 %v659_v3  ;;  %598 = vmatprep.subr.bf16.mxu0 %v597_v4  ;;  %v387_v3 = vld [vmem:[#allocation6 + $0x110] sm:$0xff]  ;;  %v390_v4 = vld [vmem:[#allocation6 + $0x128] sm:$0xff] }
  0x74   :  { %662 = vmatprep.subr.bf16.mxu1 %v661_v9  ;;  %v699_v6 = vpack.c.bf16 %v387_v3, %v385_v2  ;;  %v701_v7 = vpack.c.bf16 %v392_v5, %v390_v4  ;;  %v391_v9 = vld [vmem:[#allocation6 + $0x130] sm:$0xff] }
  0x75   :  { %v703_v13 = vpack.c.bf16 %v391_v9, %v389_v8 }
  0x76   :  { %600 = vmatpush1.bf16.msra.mxu0 %v599_v14  ;;  %v705_v14 = vpack.c.bf16 %v396_v12, %v394_v10 }
  0x77   :  { %664 = vmatpush1.bf16.msra.mxu1 %v663_v15  ;;  %666 = vmatprep.subr.bf16.mxu0 %v665_v16  ;;  %v393_v15 = vld [vmem:[#allocation6 + $0x140] sm:$0xff]  ;;  %v395_v16 = vld [vmem:[#allocation6 + $0x150] sm:$0xff] }
  0x78   :  { %v707_v20 = vpack.c.bf16 %v395_v16, %v393_v15 }
  0x79   :  { %200 = vmatmul.mubr.f32.vlgmr.msra.gmra.mrb[0].mxu0 %v897_v25  ;;  %v679_v25 = vpack.c.bf16 %v367_v39, %v365_v38  ;;  %v412_v38 = vld [vmem:[#allocation6 + $0x1d8] sm:$0xff] }
  0x7a   :  { %346 = vmatmul.mubr.f32.vlgmr.msra.gmra.mrb[0].mxu1 %v906_v28  ;;  %668 = vmatpush1.bf16.msra.mxu0 %v667_v22  ;;  %v681_v28 = vpack.c.bf16 %v372_v41, %v370_v40  ;;  %v397_v22 = vld [vmem:[#allocation6 + $0x160] sm:$0xff] }
  0x7b   :  { %670 = vmatprep.subr.bf16.mxu0 %v669_v23  ;;  %492 = vmatprep.mubr.f32.mxu0 %v425_v27  ;;  %v399_v23 = vld [vmem:[#allocation6 + $0x170] sm:$0xff]  ;;  %v409_v41 = vld [vmem:[#allocation6 + $0x1c0] sm:$0xff] }
  0x7c   :  { %v711_v27 = vpack.c.bf16 %v399_v23, %v397_v22 }
  0x7e   :  { %672 = vmatpush1.bf16.msra.mxu0 %v671_v11  ;;  %v403_v11 = vld [vmem:[#allocation6 + $0x190] sm:$0xff] }
  0x7f   :  { %674 = vmatprep.subr.bf16.mxu0 %v673_v31  ;;  %v406_v31 = vld [vmem:[#allocation6 + $0x1a8] sm:$0xff]  ;;  %v715_v33 = vpack.c.bf16 %v403_v11, %v401_v30 }
  0x80   :  { %v717_v34 = vpack.c.bf16 %v408_v32, %v406_v31 }
  0x82   :  { %676 = vmatpush1.bf16.msra.mxu0 %v675_v36  ;;  %v407_v36 = vld [vmem:[#allocation6 + $0x1b0] sm:$0xff] }
  0x83   :  { %678 = vmatprep.subr.bf16.mxu0 %v677_v37  ;;  %v410_v37 = vld [vmem:[#allocation6 + $0x1c8] sm:$0xff]  ;;  %v719_v39 = vpack.c.bf16 %v407_v36, %v405_v35 }
  0x84   :  { %v721_v40 = vpack.c.bf16 %v412_v38, %v410_v37 }
  0x86   :  { %680 = vmatpush1.bf16.msra.mxu0 %v679_v25  ;;  %v411_v25 = vld [vmem:[#allocation6 + $0x1d0] sm:$0xff] }
  0x87   :  { %682 = vmatprep.subr.bf16.mxu0 %v681_v28  ;;  %v414_v28 = vld [vmem:[#allocation6 + $0x1e8] sm:$0xff]  ;;  %v723_v43 = vpack.c.bf16 %v411_v25, %v409_v41 }
  0x88   :  { %v725_v44 = vpack.c.bf16 %v416_v42, %v414_v28 }
  0x8a   :  { %684 = vmatpush1.bf16.msra.mxu0 %v683_v46  ;;  %v415_v46 = vld [vmem:[#allocation6 + $0x1f0] sm:$0xff] }
  0x8b   :  { %686 = vmatprep.subr.bf16.mxu0 %v685_v47  ;;  %v727_v47 = vpack.c.bf16 %v415_v46, %v413_v45 }
  0x8e   :  { %688 = vmatpush1.bf16.msra.mxu0 %v687_v52 }
  0x8f   :  { %690 = vmatprep.subr.bf16.mxu0 %v689_v53 }
  0x92   :  { %692 = vmatpush1.bf16.msra.mxu0 %v691_v58 }
  0x93   :  { %694 = vmatprep.subr.bf16.mxu0 %v693_v59 }
  0x96   :  { %696 = vmatpush1.bf16.msra.mxu0 %v695_v0 }
  0x97   :  { %698 = vmatprep.subr.bf16.mxu0 %v697_v1 }
  0x9a   :  { %700 = vmatpush1.bf16.msra.mxu0 %v699_v6 }
  0x9b   :  { %702 = vmatprep.subr.bf16.mxu0 %v701_v7 }
  0x9e   :  { %704 = vmatpush1.bf16.msra.mxu0 %v703_v13 }
  0x9f   :  { %706 = vmatprep.subr.bf16.mxu0 %v705_v14 }
  0xa2   :  { %708 = vmatpush1.bf16.msra.mxu0 %v707_v20 }
  0xa3   :  { %710 = vmatprep.subr.bf16.mxu0 %v709_v21 }
  0xa6   :  { %712 = vmatpush1.bf16.msra.mxu0 %v711_v27 }
  0xa7   :  { %714 = vmatprep.subr.bf16.mxu0 %v713_v29 }
  0xaa   :  { %716 = vmatpush1.bf16.msra.mxu0 %v715_v33 }
  0xab   :  { %718 = vmatprep.subr.bf16.mxu0 %v717_v34 }
  0xae   :  { %720 = vmatpush1.bf16.msra.mxu0 %v719_v39 }
  0xaf   :  { %722 = vmatprep.subr.bf16.mxu0 %v721_v40 }
  0xb2   :  { %724 = vmatpush1.bf16.msra.mxu0 %v723_v43 }
  0xb3   :  { %726 = vmatprep.subr.bf16.mxu0 %v725_v44 }
  0xb6   :  { %728 = vmatpush1.bf16.msra.mxu0 %v727_v47 }
  0xb9   :  { %493 = vmatmul.mubr.f32.vlgmr.msra.gmra.mrb[2].mxu0 %v915_v19 }
 0x14c   :  { %v201_v48 = vpop.f32.mrb[0].mxu0 }
 0x14d   :  { %v347_v49 = vpop.f32.mrb[0].mxu1  ;;  %v203_v50 = vpop.f32.mrb[1].mxu0 }
 0x14e   :  { %v499_v51 = vsub.f32 %v201_v48, %v347_v49  ;;  %v349_v52 = vpop.f32.mrb[1].mxu1 }
 0x14f   :  { %v500_v53 = vsub.f32 %v203_v50, %v349_v52 }
 0x151   :  { %v503_v54 = vcombine.low %v499_v51, %v500_v53 }
 0x153   :  { %535 = vst.sshfl [vmem:[%s932_s4] sm:$0x33 pattern:$0x76325410] %v503_v54 }
 0x18c   :  { %v494_v55 = vpop.f32.mrb[2].mxu0 }
 0x18d   :  { %v513_v56 = vsub.f32 %v494_v55, %v201_v48  ;;  %v496_v57 = vpop.f32.mrb[3].mxu0 }
 0x18e   :  { %v514_v58 = vsub.f32 %v496_v57, %v203_v50 }
 0x18f   :  { %v515_v59 = vsub.f32 %v513_v56, %v347_v49 }
 0x190   :  { %v516_v60 = vsub.f32 %v514_v58, %v349_v52 }
 0x192   :  { %v519_v61 = vcombine.low %v515_v59, %v516_v60 }
 0x194   :  { %536 = vst.sshfl [vmem:[%s932_s4 + $0x4] sm:$0x33 pattern:$0x76325410] %v519_v61 }
 0x195   :  { %533 = vsyncpa [#allocation3], 1 }
 0x196   :  { %534 = vsyncpa [#allocation5], 1 }

</bundles_post_ra>
